<compile_context>
chip_gen: v7x
topology: tpu7x:2x2x1
jax: 0.10.0
libtpu: 0.0.40
codegen_flags: <defaults>
</compile_context>

<pallas_src>
import functools

import jax
import jax.numpy as jnp
from jax.experimental import pallas as pl
from jax.experimental.pallas import tpu as pltpu

LN_EPS = 1e-5


def residual_mlp_block_kernel(x_ref, w_ref, p_ref, o_ref, *, f_out):
    """fc -> LayerNorm -> ReLU -> (eval) dropout -> +shortcut -> ReLU, fused.

    One MXU pass computes [x @ W_fc | x @ W_sc] (2*f_out lanes); all
    LayerNorm / ReLU / residual math stays in f32.
    """
    x = x_ref[...]                                   # (tile_b, F_in)
    w = w_ref[...]                                   # (F_in, 2*F_out)

    # Fused matmul, f32 accumulation. Operand dtype follows the packed weight
    # dtype (f32 by default; bf16 if the caller packed bf16 weights).
    y = jnp.dot(x.astype(w.dtype), w,
                preferred_element_type=jnp.float32)  # (tile_b, 2*F_out) f32
    y = y + p_ref[0:1, :]                            # [b_fc | b_sc], lane-aligned

    h = y[:, :f_out]                                 # fc path
    res = y[:, f_out:]                               # shortcut path
    gamma = p_ref[1:2, :f_out]                       # lane-0-aligned rows
    beta = p_ref[2:3, :f_out]

    # LayerNorm over the last dim (biased variance, eps=1e-5, affine).
    mean = jnp.mean(h, axis=-1, keepdims=True)
    centered = h - mean
    var = jnp.mean(centered * centered, axis=-1, keepdims=True)
    h = centered * jax.lax.rsqrt(var + LN_EPS) * gamma + beta

    h = jnp.maximum(h, 0.0)                          # ReLU
    # TODO(synk): training-mode dropout not implemented (eval => identity).
    o_ref[...] = jnp.maximum(h + res, 0.0).astype(o_ref.dtype)


def _vmem_capacity_bytes():
    try:
        return int(pltpu.get_tpu_info().vmem_capacity_bytes)
    except Exception:
        return 64 << 20  # conservative (v7x per-TC VMEM)


def _pick_tile_b(B, bytes_per_row, vmem_capacity):
    """Batch tile selection.

    Small problems (whole x + out footprint <= 2 MiB, or B not a multiple of
    8): one grid step, tile_b = B -- per-step overhead (~0.35 us) dominates and
    there is no DMA worth hiding.  Large problems: biggest multiple-of-8
    divisor of B that fits ~40% of VMEM double-buffered while keeping >= 4 grid
    steps (>= 2 per TensorCore under megacore sharding).
    """
    if B % 8 != 0 or B * bytes_per_row <= (2 << 20):
        return B
    budget = int(0.4 * vmem_capacity)
    max_rows = max(8, budget // (2 * bytes_per_row))     # double-buffered tiles
    target = min(max_rows, 2048, B // 4)
    t = max(8, (target // 8) * 8)
    while t > 8 and B % t != 0:
        t -= 8
    return t


def pack_residual_mlp_params(w_fc, b_fc, gamma, beta, w_sc=None, b_sc=None,
                             *, compute_dtype=jnp.float32):
    """One-time parameter packing (do at model setup, NOT per forward call).

    Weights are (in_features, out_features), i.e. the transpose of
    torch.nn.Linear.weight.  Pass w_sc=None for the nn.Identity shortcut
    (in_features == out_features).
    """
    f_in, f_out = w_fc.shape
    if w_sc is None:
        w_sc = jnp.eye(f_in, f_out, dtype=jnp.float32)   # identity shortcut
    if b_sc is None:
        b_sc = jnp.zeros((f_out,), jnp.float32)
    w_fused = jnp.concatenate([w_fc, w_sc], axis=1).astype(compute_dtype)
    zeros = jnp.zeros((f_out,), jnp.float32)
    params = jnp.stack([
        jnp.concatenate([b_fc, b_sc]),     # row 0: fused bias, aligned with y
        jnp.concatenate([gamma, zeros]),   # row 1: gamma at lane 0
        jnp.concatenate([beta, zeros]),    # row 2: beta  at lane 0
    ]).astype(jnp.float32)                 # (3, 2*F_out)
    return w_fused, params


def residual_mlp_block(x, w_fused, params, *, tile_b=None):
    """x: (B, F_in).  w_fused/params from pack_residual_mlp_params."""
    B, F_in = x.shape
    two_f = w_fused.shape[1]
    F_out = two_f // 2
    assert w_fused.shape[0] == F_in and two_f == 2 * F_out
    assert params.shape == (3, two_f)

    bytes_per_row = (F_in + F_out) * x.dtype.itemsize
    vmem_capacity = _vmem_capacity_bytes()
    if tile_b is None:
        tile_b = _pick_tile_b(B, bytes_per_row, vmem_capacity)
    # Guard explicit tile_b against the (8, 128) BlockSpec constraint.
    assert tile_b == B or (tile_b % 8 == 0 and B % tile_b == 0), (
        "tile_b must equal B or be a multiple of 8 dividing B")

    grid_steps = B // tile_b
    grid = (grid_steps,)

    # Generation-aware VMEM budget: double-buffered x/out tiles + (at most
    # double-buffered) resident weight/param blocks, 4x headroom, capped at
    # 7/8 of physical VMEM (~112 MiB v5e/v6e, ~56 MiB v7x).
    w_bytes = F_in * two_f * w_fused.dtype.itemsize
    p_bytes = 3 * two_f * params.dtype.itemsize
    need = 2 * tile_b * bytes_per_row + 2 * (w_bytes + p_bytes)
    vmem_bytes = int(min(max(4 * need, 8 << 20), (vmem_capacity * 7) // 8))

    kernel = functools.partial(residual_mlp_block_kernel, f_out=F_out)
    out_shape = jax.ShapeDtypeStruct((B, F_out), x.dtype)

    def call(single_buffer_consts):
        # Weight/param blocks never change across the grid -> single buffer
        # (halves their VMEM footprint) when there is more than one step.
        const_kw = ({"pipeline_mode": pl.Buffered(1)}
                    if (single_buffer_consts and grid_steps > 1) else {})
        return pl.pallas_call(
            kernel,
            out_shape=out_shape,
            grid_spec=pltpu.PrefetchScalarGridSpec(
                num_scalar_prefetch=0,
                grid=grid,
                in_specs=[
                    pl.BlockSpec((tile_b, F_in), lambda i: (i, 0)),        # x
                    pl.BlockSpec((F_in, two_f), lambda i: (0, 0),          # W
                                 **const_kw),
                    pl.BlockSpec((3, two_f), lambda i: (0, 0),             # params
                                 **const_kw),
                ],
                out_specs=pl.BlockSpec((tile_b, F_out), lambda i: (i, 0)),
            ),
            compiler_params=pltpu.CompilerParams(
                dimension_semantics=(
                    ("parallel",) if grid_steps > 1 else ("arbitrary",)),
                vmem_limit_bytes=vmem_bytes),
        )(x, w_fused, params)

    try:
        return call(True)
    except Exception:
        # pipeline_mode unsupported on this Pallas version -> default buffering.
        return call(False)


def reference(x, w_fc, b_fc, gamma, beta, w_sc, b_sc):
    h = x @ w_fc + b_fc
    mean = jnp.mean(h, axis=-1, keepdims=True)
    var = jnp.mean((h - mean) ** 2, axis=-1, keepdims=True)
    h = (h - mean) / jnp.sqrt(var + LN_EPS) * gamma + beta
    h = jnp.maximum(h, 0.0)
    res = x @ w_sc + b_sc
    return jnp.maximum(h + res, 0.0)


if __name__ == "__main__":
    in_features, out_features = 32, 64
    batch = 64

    key = jax.random.PRNGKey(0)
    kx, kw1, kb1, kw2, kb2 = jax.random.split(key, 5)

    # Deterministic synthetic parameters (PyTorch-Linear-style uniform bounds).
    bound = 1.0 / jnp.sqrt(in_features)
    w_fc = jax.random.uniform(kw1, (in_features, out_features),
                              minval=-bound, maxval=bound, dtype=jnp.float32)
    b_fc = jax.random.uniform(kb1, (out_features,),
                              minval=-bound, maxval=bound, dtype=jnp.float32)
    gamma = jnp.ones((out_features,), jnp.float32)   # LayerNorm weight init
    beta = jnp.zeros((out_features,), jnp.float32)   # LayerNorm bias init
    w_sc = jax.random.uniform(kw2, (in_features, out_features),
                              minval=-bound, maxval=bound, dtype=jnp.float32)
    b_sc = jax.random.uniform(kb2, (out_features,),
                              minval=-bound, maxval=bound, dtype=jnp.float32)

    x = jax.random.normal(kx, (batch, in_features), dtype=jnp.float32)

    # One-time packing (hoisted out of the forward path).
    w_fused, params = pack_residual_mlp_params(w_fc, b_fc, gamma, beta,
                                               w_sc, b_sc)

    out = residual_mlp_block(x, w_fused, params)
    out = jax.block_until_ready(out)

    ref = reference(x, w_fc, b_fc, gamma, beta, w_sc, b_sc)
    assert out.shape == (batch, out_features)
    # Tolerance covers the MXU's default-precision operand handling.
    assert jnp.allclose(out, ref, atol=1e-2, rtol=1e-2), (
        float(jnp.max(jnp.abs(out - ref))))

    print("KERNEL_OK")
</pallas_src>

<mosaic_0001>
module attributes {stable_mosaic.version = 11 : i64} {
  func.func @residual_mlp_block_kernel(%arg0: i32, %arg1: memref<64x32xf32, #tpu.memory_space<vmem>>, %arg2: memref<32x128xf32, #tpu.memory_space<vmem>>, %arg3: memref<3x128xf32, #tpu.memory_space<vmem>>, %arg4: memref<64x64xf32, #tpu.memory_space<vmem>>) attributes {dimension_semantics = [#tpu.dimension_semantics<arbitrary>], iteration_bounds = array<i64: 1>, scalar_prefetch = 0 : i64, scratch_operands = 0 : i64, tpu.core_type = #tpu.core_type<tc>, window_params = [{transform_indices = @transform_0, window_bounds = array<i64: 64, 32>}, {pipeline_mode = #tpu.pipeline_mode<synchronous>, transform_indices = @transform_1, window_bounds = array<i64: 32, 128>}, {pipeline_mode = #tpu.pipeline_mode<synchronous>, transform_indices = @transform_2, window_bounds = array<i64: 3, 128>}, {transform_indices = @transform_3, window_bounds = array<i64: 64, 64>}]} {
    %c0 = arith.constant 0 : index
    %c0_0 = arith.constant 0 : index
    %0 = vector.load %arg1[%c0, %c0_0] : memref<64x32xf32, #tpu.memory_space<vmem>>, vector<64x32xf32>
    %c0_1 = arith.constant 0 : index
    %c0_2 = arith.constant 0 : index
    %1 = vector.load %arg2[%c0_1, %c0_2] : memref<32x128xf32, #tpu.memory_space<vmem>>, vector<32x128xf32>
    %cst = arith.constant dense<0.000000e+00> : vector<64x128xf32>
    %2 = tpu.matmul %0, %1, %cst {dimension_numbers = #tpu.dot_dimension_numbers<[1], [0], [0], [1], [0, 0, 1, 1], [], []>} : vector<64x32xf32>, vector<32x128xf32>, vector<64x128xf32> -> vector<64x128xf32>
    %c0_3 = arith.constant 0 : index
    %c0_4 = arith.constant 0 : index
    %3 = vector.load %arg3[%c0_3, %c0_4] : memref<3x128xf32, #tpu.memory_space<vmem>>, vector<1x128xf32>
    %4 = vector.broadcast %3 : vector<1x128xf32> to vector<64x128xf32>
    %5 = arith.addf %2, %4 : vector<64x128xf32>
    %6 = vector.extract_strided_slice %5 {offsets = [0, 0], sizes = [64, 64], strides = [1, 1]} : vector<64x128xf32> to vector<64x64xf32>
    %7 = vector.extract_strided_slice %5 {offsets = [0, 64], sizes = [64, 64], strides = [1, 1]} : vector<64x128xf32> to vector<64x64xf32>
    %c1 = arith.constant 1 : index
    %c0_5 = arith.constant 0 : index
    %8 = vector.load %arg3[%c1, %c0_5] : memref<3x128xf32, #tpu.memory_space<vmem>>, vector<1x64xf32>
    %c2 = arith.constant 2 : index
    %c0_6 = arith.constant 0 : index
    %9 = vector.load %arg3[%c2, %c0_6] : memref<3x128xf32, #tpu.memory_space<vmem>>, vector<1x64xf32>
    %cst_7 = arith.constant dense<0.000000e+00> : vector<64xf32>
    %10 = vector.multi_reduction <add>, %6, %cst_7 [1] : vector<64x64xf32> to vector<64xf32>
    %11 = vector.shape_cast %10 : vector<64xf32> to vector<64x1xf32>
    %cst_8 = arith.constant 6.400000e+01 : f32
    %12 = vector.broadcast %cst_8 : f32 to vector<64x1xf32>
    %13 = arith.divf %11, %12 : vector<64x1xf32>
    %14 = vector.broadcast %13 : vector<64x1xf32> to vector<64x64xf32>
    %15 = arith.subf %6, %14 : vector<64x64xf32>
    %16 = arith.mulf %15, %15 : vector<64x64xf32>
    %cst_9 = arith.constant dense<0.000000e+00> : vector<64xf32>
    %17 = vector.multi_reduction <add>, %16, %cst_9 [1] : vector<64x64xf32> to vector<64xf32>
    %18 = vector.shape_cast %17 : vector<64xf32> to vector<64x1xf32>
    %cst_10 = arith.constant 6.400000e+01 : f32
    %19 = vector.broadcast %cst_10 : f32 to vector<64x1xf32>
    %20 = arith.divf %18, %19 : vector<64x1xf32>
    %cst_11 = arith.constant 9.99999974E-6 : f32
    %21 = vector.broadcast %cst_11 : f32 to vector<64x1xf32>
    %22 = arith.addf %20, %21 : vector<64x1xf32>
    %23 = math.rsqrt %22 : vector<64x1xf32>
    %24 = vector.broadcast %23 : vector<64x1xf32> to vector<64x64xf32>
    %25 = arith.mulf %15, %24 : vector<64x64xf32>
    %26 = vector.broadcast %8 : vector<1x64xf32> to vector<64x64xf32>
    %27 = arith.mulf %25, %26 : vector<64x64xf32>
    %28 = vector.broadcast %9 : vector<1x64xf32> to vector<64x64xf32>
    %29 = arith.addf %27, %28 : vector<64x64xf32>
    %cst_12 = arith.constant 0.000000e+00 : f32
    %30 = vector.broadcast %cst_12 : f32 to vector<64x64xf32>
    %31 = arith.maximumf %29, %30 : vector<64x64xf32>
    %32 = arith.addf %31, %7 : vector<64x64xf32>
    %cst_13 = arith.constant 0.000000e+00 : f32
    %33 = vector.broadcast %cst_13 : f32 to vector<64x64xf32>
    %34 = arith.maximumf %32, %33 : vector<64x64xf32>
    %c0_14 = arith.constant 0 : index
    %c0_15 = arith.constant 0 : index
    %35 = vector.load %arg4[%c0_14, %c0_15] : memref<64x64xf32, #tpu.memory_space<vmem>>, vector<64x64xf32>
    tpu.vector_store %arg4[%c0_14, %c0_15], %34 {strides = array<i32>} : memref<64x64xf32, #tpu.memory_space<vmem>>, vector<64x64xf32>,
    return
  }
  func.func @transform_0(%arg0: i32) -> (i32, i32) {
    %c0_i32 = arith.constant 0 : i32
    %c0_i32_0 = arith.constant 0 : i32
    return %arg0, %c0_i32 : i32, i32
  }
  func.func @transform_1(%arg0: i32) -> (i32, i32) {
    %c0_i32 = arith.constant 0 : i32
    %c0_i32_0 = arith.constant 0 : i32
    %c0_i32_1 = arith.constant 0 : i32
    return %c0_i32, %c0_i32_0 : i32, i32
  }
  func.func @transform_2(%arg0: i32) -> (i32, i32) {
    %c0_i32 = arith.constant 0 : i32
    %c0_i32_0 = arith.constant 0 : i32
    %c0_i32_1 = arith.constant 0 : i32
    return %c0_i32, %c0_i32_0 : i32, i32
  }
  func.func @transform_3(%arg0: i32) -> (i32, i32) {
    %c0_i32 = arith.constant 0 : i32
    %c0_i32_0 = arith.constant 0 : i32
    return %arg0, %c0_i32 : i32, i32
  }
}

module attributes {stable_mosaic.version = 11 : i64} {
  func.func @residual_mlp_block_kernel(%arg0: i32, %arg1: memref<64x32xf32, #tpu.memory_space<vmem>>, %arg2: memref<32x128xf32, #tpu.memory_space<vmem>>, %arg3: memref<3x128xf32, #tpu.memory_space<vmem>>, %arg4: memref<64x64xf32, #tpu.memory_space<vmem>>) attributes {dimension_semantics = [#tpu.dimension_semantics<arbitrary>], iteration_bounds = array<i64: 1>, scalar_prefetch = 0 : i64, scratch_operands = 0 : i64, tpu.core_type = #tpu.core_type<tc>, window_params = [{transform_indices = @transform_0, window_bounds = array<i64: 64, 32>}, {pipeline_mode = #tpu.pipeline_mode<synchronous>, transform_indices = @transform_1, window_bounds = array<i64: 32, 128>}, {pipeline_mode = #tpu.pipeline_mode<synchronous>, transform_indices = @transform_2, window_bounds = array<i64: 3, 128>}, {transform_indices = @transform_3, window_bounds = array<i64: 64, 64>}]} {
    %c0 = arith.constant 0 : index
    %c0_0 = arith.constant 0 : index
    %0 = vector.load %arg1[%c0, %c0_0] : memref<64x32xf32, #tpu.memory_space<vmem>>, vector<64x32xf32>
    %c0_1 = arith.constant 0 : index
    %c0_2 = arith.constant 0 : index
    %1 = vector.load %arg2[%c0_1, %c0_2] : memref<32x128xf32, #tpu.memory_space<vmem>>, vector<32x128xf32>
    %cst = arith.constant dense<0.000000e+00> : vector<64x128xf32>
    %2 = tpu.matmul %0, %1, %cst {dimension_numbers = #tpu.dot_dimension_numbers<[1], [0], [0], [1], [0, 0, 1, 1], [], []>} : vector<64x32xf32>, vector<32x128xf32>, vector<64x128xf32> -> vector<64x128xf32>
    %c0_3 = arith.constant 0 : index
    %c0_4 = arith.constant 0 : index
    %3 = vector.load %arg3[%c0_3, %c0_4] : memref<3x128xf32, #tpu.memory_space<vmem>>, vector<1x128xf32>
    %4 = vector.broadcast %3 : vector<1x128xf32> to vector<64x128xf32>
    %5 = arith.addf %2, %4 : vector<64x128xf32>
    %6 = vector.extract_strided_slice %5 {offsets = [0, 0], sizes = [64, 64], strides = [1, 1]} : vector<64x128xf32> to vector<64x64xf32>
    %7 = vector.extract_strided_slice %5 {offsets = [0, 64], sizes = [64, 64], strides = [1, 1]} : vector<64x128xf32> to vector<64x64xf32>
    %c1 = arith.constant 1 : index
    %c0_5 = arith.constant 0 : index
    %8 = vector.load %arg3[%c1, %c0_5] : memref<3x128xf32, #tpu.memory_space<vmem>>, vector<1x64xf32>
    %c2 = arith.constant 2 : index
    %c0_6 = arith.constant 0 : index
    %9 = vector.load %arg3[%c2, %c0_6] : memref<3x128xf32, #tpu.memory_space<vmem>>, vector<1x64xf32>
    %cst_7 = arith.constant dense<0.000000e+00> : vector<64xf32>
    %10 = vector.multi_reduction <add>, %6, %cst_7 [1] : vector<64x64xf32> to vector<64xf32>
    %11 = vector.shape_cast %10 : vector<64xf32> to vector<64x1xf32>
    %cst_8 = arith.constant 6.400000e+01 : f32
    %12 = vector.broadcast %cst_8 : f32 to vector<64x1xf32>
    %13 = arith.divf %11, %12 : vector<64x1xf32>
    %14 = vector.broadcast %13 : vector<64x1xf32> to vector<64x64xf32>
    %15 = arith.subf %6, %14 : vector<64x64xf32>
    %16 = arith.mulf %15, %15 : vector<64x64xf32>
    %cst_9 = arith.constant dense<0.000000e+00> : vector<64xf32>
    %17 = vector.multi_reduction <add>, %16, %cst_9 [1] : vector<64x64xf32> to vector<64xf32>
    %18 = vector.shape_cast %17 : vector<64xf32> to vector<64x1xf32>
    %cst_10 = arith.constant 6.400000e+01 : f32
    %19 = vector.broadcast %cst_10 : f32 to vector<64x1xf32>
    %20 = arith.divf %18, %19 : vector<64x1xf32>
    %cst_11 = arith.constant 9.99999974E-6 : f32
    %21 = vector.broadcast %cst_11 : f32 to vector<64x1xf32>
    %22 = arith.addf %20, %21 : vector<64x1xf32>
    %23 = math.rsqrt %22 : vector<64x1xf32>
    %24 = vector.broadcast %23 : vector<64x1xf32> to vector<64x64xf32>
    %25 = arith.mulf %15, %24 : vector<64x64xf32>
    %26 = vector.broadcast %8 : vector<1x64xf32> to vector<64x64xf32>
    %27 = arith.mulf %25, %26 : vector<64x64xf32>
    %28 = vector.broadcast %9 : vector<1x64xf32> to vector<64x64xf32>
    %29 = arith.addf %27, %28 : vector<64x64xf32>
    %cst_12 = arith.constant 0.000000e+00 : f32
    %30 = vector.broadcast %cst_12 : f32 to vector<64x64xf32>
    %31 = arith.maximumf %29, %30 : vector<64x64xf32>
    %32 = arith.addf %31, %7 : vector<64x64xf32>
    %cst_13 = arith.constant 0.000000e+00 : f32
    %33 = vector.broadcast %cst_13 : f32 to vector<64x64xf32>
    %34 = arith.maximumf %32, %33 : vector<64x64xf32>
    %c0_14 = arith.constant 0 : index
    %c0_15 = arith.constant 0 : index
    %35 = vector.load %arg4[%c0_14, %c0_15] : memref<64x64xf32, #tpu.memory_space<vmem>>, vector<64x64xf32>
    tpu.vector_store %arg4[%c0_14, %c0_15], %34 {strides = array<i32>} : memref<64x64xf32, #tpu.memory_space<vmem>>, vector<64x64xf32>,
    return
  }
  func.func @transform_0(%arg0: i32) -> (i32, i32) {
    %c0_i32 = arith.constant 0 : i32
    %c0_i32_0 = arith.constant 0 : i32
    return %arg0, %c0_i32 : i32, i32
  }
  func.func @transform_1(%arg0: i32) -> (i32, i32) {
    %c0_i32 = arith.constant 0 : i32
    %c0_i32_0 = arith.constant 0 : i32
    %c0_i32_1 = arith.constant 0 : i32
    return %c0_i32, %c0_i32_0 : i32, i32
  }
  func.func @transform_2(%arg0: i32) -> (i32, i32) {
    %c0_i32 = arith.constant 0 : i32
    %c0_i32_0 = arith.constant 0 : i32
    %c0_i32_1 = arith.constant 0 : i32
    return %c0_i32, %c0_i32_0 : i32, i32
  }
  func.func @transform_3(%arg0: i32) -> (i32, i32) {
    %c0_i32 = arith.constant 0 : i32
    %c0_i32_0 = arith.constant 0 : i32
    return %arg0, %c0_i32 : i32, i32
  }
}

</mosaic_0001>

<bundles_post_ra>
// kernel: tpu_custom_call.1
= control target key start
LH: loop header
LB: loop body
LE: loop exit
PB: predicated region body
PF: predicated region fallthrough
CT: control target
= control target key end

     0   :  { %vm32_vm0 = vcmask 261120   ;;  %s666_s0 = inlined_call_operand.vmem [shape: f32[64,32], index: 0, kind: input, shape index: {}]   ;;  %s667_s1 = inlined_call_operand.vmem [shape: f32[32,128], index: 1, kind: input, shape index: {}]   ;;  %s668_s2 = inlined_call_operand.vmem [shape: f32[3,128], index: 2, kind: input, shape index: {}]   ;;  %s669_s3 = inlined_call_operand.hbm [shape: f32[64,64], index: 3, kind: output, shape index: {}]  }
   0x1   :  { %v23_v0 = vld [vmem:[%s667_s1] sm:$0xff]  ;;  %v24_v1 = vld [vmem:[%s667_s1 + $0x8] sm:$0xff]  ;;  %v25_v2 = vld [vmem:[%s667_s1 + $0x10] sm:$0xff] }
   0x2   :  { %v417_v3 = vpack.c.bf16 %v24_v1, %v23_v0  ;;  %v26_v4 = vld [vmem:[%s667_s1 + $0x18] sm:$0xff]  ;;  %v15_v5 = vld [vmem:[%s666_s0] sm:$0xff] }
   0x3   :  { %v19_v6 = vld [vmem:[%s666_s0 + $0x20] sm:$0xff]  ;;  %v421_v7 = vpack.c.bf16 %v26_v4, %v25_v2  ;;  %405 = vmatprep.mubr.msk.f32.mxu0 %vm32_vm0, %v15_v5 }
   0x4   :  { %411 = vmatprep.mubr.msk.f32.mxu1 %vm32_vm0, %v19_v6  ;;  %418 = vmatprep.subr.bf16.mxu0 %v417_v3 }
   0x5   :  { %425 = vmatprep.subr.bf16.mxu1 %v417_v3  ;;  %420 = vmatpush3.bf16.msra.mxu0 %v417_v3 }
   0x6   :  { %427 = vmatpush3.bf16.msra.mxu1 %v417_v3 }
   0x7   :  { %8 = vsyncpa [#allocation3], 0  ;;  %422 = vmatprep.subr.bf16.mxu0 %v421_v7  ;;  %426 = vmatprep.subr.bf16.mxu1 %v421_v7  ;;  %v16_v8 = vld [vmem:[%s666_s0 + $0x8] sm:$0xff]  ;;  %v17_v10 = vld [vmem:[%s666_s0 + $0x10] sm:$0xff]  ;;  %vm164_vm1 = vcmask 523264  }
   0x8   :  { %v20_v9 = vld [vmem:[%s666_s0 + $0x28] sm:$0xff]  ;;  %v21_v11 = vld [vmem:[%s666_s0 + $0x30] sm:$0xff]  ;;  %v18_v12 = vld [vmem:[%s666_s0 + $0x18] sm:$0xff] }
   0x9   :  { %424 = vmatpush3.bf16.msra.mxu0 %v421_v7  ;;  %v22_v13 = vld [vmem:[%s666_s0 + $0x38] sm:$0xff]  ;;  %v374_v14 = vld [vmem:[%s668_s2] ss:$0 sm:$0xff]  ;;  %s473_s0 = smov 64  }
   0xa   :  { %428 = vmatpush3.bf16.msra.mxu1 %v421_v7 }
   0xc   :  { %406 = vmatmul.mubr.msk.f32.vlgmr.msra.gmra.mrb[0].mxu0 %vm32_vm0, %v16_v8 }
   0xd   :  { %412 = vmatmul.mubr.msk.f32.vlgmr.msra.gmra.mrb[0].mxu1 %vm32_vm0, %v20_v9  ;;  %408 = vmatprep.mubr.msk.f32.mxu0 %vm32_vm0, %v17_v10 }
   0xe   :  { %414 = vmatprep.mubr.msk.f32.mxu1 %vm32_vm0, %v21_v11 }
  0x10   :  { %409 = vmatmul.mubr.msk.f32.gmra.mrb[2].mxu0 %vm32_vm0, %v18_v12 }
  0x11   :  { %415 = vmatmul.mubr.msk.f32.gmra.mrb[2].mxu1 %vm32_vm0, %v22_v13 }
  0xdf   :  { %v407_v15 = vpop.f32.mrb[0].mxu0 }
  0xe0   :  { %v413_v16 = vpop.f32.mrb[0].mxu1  ;;  %v544_v17 = vadd.f32 %v407_v15, %v374_v14  ;;  %v123_v19 = vpop.f32.mrb[1].mxu0 }
  0xe1   :  { %v546_v18 = vadd.f32 %v413_v16, %v374_v14  ;;  %v143_v20 = vpop.f32.mrb[1].mxu1  ;;  %v548_v21 = vadd.f32 %v374_v14, %v123_v19 }
  0xe2   :  { %v168_v23 = vsel %vm164_vm1, %v544_v17, 0.0  ;;  %v558_v30 = vadd.f32 %v374_v14, %v143_v20 }
  0xe3   :  { %v180_v22 = vsel %vm164_vm1, %v546_v18, 0.0  ;;  %169 = vadd.xlane.f32.xlu0 %v168_v23  ;;  %v410_v24 = vpop.f32.mrb[2].mxu0  ;;  %v165_v32 = vsel %vm164_vm1, %v548_v21, 0.0 }
  0xe4   :  { %181 = vadd.xlane.f32.xlu1 %v180_v22  ;;  %v416_v25 = vpop.f32.mrb[2].mxu1  ;;  %v554_v26 = vadd.f32 %v410_v24, %v374_v14  ;;  %v133_v27 = vpop.f32.mrb[3].mxu0  ;;  %v177_v36 = vsel %vm164_vm1, %v558_v30, 0.0 }
  0xe5   :  { %v153_v28 = vpop.f32.mrb[3].mxu1  ;;  %v556_v29 = vadd.f32 %v374_v14, %v133_v27  ;;  %v564_v33 = vadd.f32 %v416_v25, %v374_v14 }
  0xe6   :  { %v174_v31 = vsel %vm164_vm1, %v554_v26, 0.0  ;;  %v566_v34 = vadd.f32 %v374_v14, %v153_v28 }
  0xe7   :  { %166 = vadd.xlane.f32.xlu0 %v165_v32  ;;  %v171_v35 = vsel %vm164_vm1, %v556_v29, 0.0  ;;  %v186_v37 = vsel %vm164_vm1, %v564_v33, 0.0 }
  0xe8   :  { %175 = vadd.xlane.f32.xlu1 %v174_v31  ;;  %v183_v38 = vsel %vm164_vm1, %v566_v34, 0.0 }
  0xeb   :  { %178 = vadd.xlane.f32.xlu0 %v177_v36 }
  0xec   :  { %172 = vadd.xlane.f32.xlu1 %v171_v35 }
  0xef   :  { %184 = vadd.xlane.f32.xlu0 %v183_v38 }
  0xf0   :  { %187 = vadd.xlane.f32.xlu1 %v186_v37  ;;  %v383_v37 = vld [vmem:[%s668_s2 + $0x1] ss:$0 sm:$0xff] }
 0x170   :  { %v170_v40 = vpop.xlane.xlu0 %169 }
 0x171   :  { %v182_v39 = vpop.xlane.xlu1 %181  ;;  %v191_v42 = vmul.f32 0.015625, %v170_v40 }
 0x172   :  { %v195_v41 = vmul.f32 0.015625, %v182_v39 }
 0x173   :  { %v580_v44 = vsub.f32 %v544_v17, %v191_v42 }
 0x174   :  { %v577_v43 = vsub.f32 %v546_v18, %v195_v41  ;;  %v167_v46 = vpop.xlane.xlu0 %166  ;;  %v384_v41 = vld [vmem:[%s668_s2 + $0x2] ss:$0 sm:$0xff]  ;;  %s474_s2 = smov [#allocation2]  }
 0x175   :  { %v176_v45 = vpop.xlane.xlu1 %175  ;;  %v190_v48 = vmul.f32 0.015625, %v167_v46  ;;  %v207_v49 = vmul.f32 %v580_v44, %v580_v44  ;;  %s363_s14 = sshll.u32 %s474_s2, 4  ;;  %s364_s14 = int_to_ptr.vmem [resolvable:$true] %s363_s14 }
 0x176   :  { %v193_v47 = vmul.f32 0.015625, %v176_v45  ;;  %v211_v53 = vmul.f32 %v577_v43, %v577_v43  ;;  %s449_s15 = scalar_lea.vmem %s364_s14, 1024  ;;  %p454_p1 = scmp.lt.s32.totalorder %s364_s14, %s364_s14 }
 0x177   :  { %v588_v51 = vsub.f32 %v548_v21, %v190_v48  ;;  %v217_v52 = vsel %vm164_vm1, %v207_v49, 0.0  ;;  %p450_p0 = scmp.ne.s32.totalorder %s364_s14, %s449_s15  ;;  %p455_p2 = scmp.lt.s32.totalorder %s449_s15, %s449_s15 }
 0x178   :  { %v585_v50 = vsub.f32 %v554_v26, %v193_v47  ;;  %218 = vadd.xlane.f32.xlu1 %v217_v52  ;;  %v179_v55 = vpop.xlane.xlu0 %178  ;;  %v229_v62 = vsel %vm164_vm1, %v211_v53, 0.0 }
 0x179   :  { %v173_v54 = vpop.xlane.xlu1 %172  ;;  %v194_v57 = vmul.f32 0.015625, %v179_v55  ;;  %v206_v58 = vmul.f32 %v588_v51, %v588_v51  ;;  %p456_p3 = por %p455_p2, %p454_p1 }
 0x17a   :  { %v192_v56 = vmul.f32 0.015625, %v173_v54  ;;  %v209_v59 = vmul.f32 %v585_v50, %v585_v50 }
 0x17b   :  { %v601_v61 = vsub.f32 %v558_v30, %v194_v57  ;;  %v214_v63 = vsel %vm164_vm1, %v206_v58, 0.0  ;;  %p457_p4 = pnand %p456_p3, %p450_p0 }
 0x17c   :  { %v598_v60 = vsub.f32 %v556_v29, %v192_v56  ;;  %230 = vadd.xlane.f32.xlu1 %v229_v62  ;;  %215 = vadd.xlane.f32.xlu0 %v214_v63  ;;  %v185_v1 = vpop.xlane.xlu0 %184  ;;  %v223_v5 = vsel %vm164_vm1, %v209_v59, 0.0 }
 0x17d   :  { %v188_v0 = vpop.xlane.xlu1 %187  ;;  %v196_v3 = vmul.f32 0.015625, %v185_v1  ;;  %v210_v4 = vmul.f32 %v601_v61, %v601_v61 }
 0x17e   :  { %v197_v2 = vmul.f32 0.015625, %v188_v0  ;;  %v208_v9 = vmul.f32 %v598_v60, %v598_v60 }
 0x17f   :  { %v612_v7 = vsub.f32 %v566_v34, %v196_v3  ;;  %v226_v8 = vsel %vm164_vm1, %v210_v4, 0.0 }
 0x180   :  { %v609_v6 = vsub.f32 %v564_v33, %v197_v2  ;;  %224 = vadd.xlane.f32.xlu1 %v223_v5  ;;  %227 = vadd.xlane.f32.xlu0 %v226_v8  ;;  %v220_v12 = vsel %vm164_vm1, %v208_v9, 0.0 }
 0x181   :  { %v212_v13 = vmul.f32 %v612_v7, %v612_v7 }
 0x182   :  { %v213_v10 = vmul.f32 %v609_v6, %v609_v6 }
 0x183   :  { %v232_v14 = vsel %vm164_vm1, %v212_v13, 0.0 }
 0x184   :  { %v235_v11 = vsel %vm164_vm1, %v213_v10, 0.0  ;;  %221 = vadd.xlane.f32.xlu0 %v220_v12 }
 0x185   :  { %236 = vadd.xlane.f32.xlu1 %v235_v11 }
 0x188   :  { %233 = vadd.xlane.f32.xlu0 %v232_v14 }
 0x196   :  { %312 = vrot.lane.b32.xlu1 %v544_v17, %s473_s0 }
 0x19a   :  { %314 = vrot.lane.b32.xlu1 %v556_v29, %s473_s0 }
 0x19e   :  { %316 = vrot.lane.b32.xlu1 %v554_v26, %s473_s0  ;;  %310 = vrot.lane.b32.xlu0 %v548_v21, %s473_s0 }
 0x1a2   :  { %320 = vrot.lane.b32.xlu1 %v546_v18, %s473_s0  ;;  %318 = vrot.lane.b32.xlu0 %v558_v30, %s473_s0 }
 0x1a6   :  { %324 = vrot.lane.b32.xlu1 %v564_v33, %s473_s0  ;;  %322 = vrot.lane.b32.xlu0 %v566_v34, %s473_s0 }
 0x205   :  { %v219_v15 = vpop.xlane.xlu1 %218 }
 0x206   :  { %v239_v16 = vmul.f32 0.015625, %v219_v15 }
 0x208   :  { %v247_v19 = vadd.f32 1e-05, %v239_v16 }
 0x209   :  { %v231_v20 = vpop.xlane.xlu1 %230  ;;  %v216_v22 = vpop.xlane.xlu0 %215 }
 0x20a   :  { %433 = vrsqrt.f32 %v247_v19  ;;  %v243_v17 = vmul.f32 0.015625, %v231_v20  ;;  %v238_v23 = vmul.f32 0.015625, %v216_v22 }
 0x20c   :  { %v251_v24 = vadd.f32 1e-05, %v243_v17  ;;  %v246_v25 = vadd.f32 1e-05, %v238_v23 }
 0x20d   :  { %v225_v26 = vpop.xlane.xlu1 %224  ;;  %v228_v21 = vpop.xlane.xlu0 %227 }
 0x20e   :  { %435 = vrsqrt.f32 %v251_v24  ;;  %v241_v18 = vmul.f32 0.015625, %v225_v26  ;;  %v242_v27 = vmul.f32 0.015625, %v228_v21 }
 0x20f   :  { %437 = vrsqrt.f32 %v246_v25 }
 0x210   :  { %v249_v28 = vadd.f32 1e-05, %v241_v18  ;;  %v250_v29 = vadd.f32 1e-05, %v242_v27 }
 0x211   :  { %v222_v31 = vpop.xlane.xlu0 %221 }
 0x212   :  { %v237_v30 = vpop.xlane.xlu1 %236  ;;  %439 = vrsqrt.f32 %v249_v28  ;;  %v240_v33 = vmul.f32 0.015625, %v222_v31 }
 0x213   :  { %v245_v32 = vmul.f32 0.015625, %v237_v30  ;;  %441 = vrsqrt.f32 %v250_v29 }
 0x214   :  { %v434_v34 = vpop.eup %433  ;;  %v248_v36 = vadd.f32 1e-05, %v240_v33 }
 0x215   :  { %v253_v35 = vadd.f32 1e-05, %v245_v32  ;;  %v263_v38 = vmul.f32 %v434_v34, %v580_v44  ;;  %v234_v40 = vpop.xlane.xlu0 %233 }
 0x216   :  { %v313_v39 = vpop.permute.xlu1 %312  ;;  %v244_v42 = vmul.f32 0.015625, %v234_v40 }
 0x217   :  { %443 = vrsqrt.f32 %v253_v35  ;;  %v275_v45 = vmul.f32 %v383_v37, %v263_v38 }
 0x218   :  { %445 = vrsqrt.f32 %v248_v36  ;;  %v436_v46 = vpop.eup %435  ;;  %v252_v47 = vadd.f32 1e-05, %v244_v42 }
 0x219   :  { %v438_v48 = vpop.eup %437  ;;  %v287_v49 = vadd.f32 %v384_v41, %v275_v45  ;;  %v267_v53 = vmul.f32 %v436_v46, %v577_v43  ;;  %v311_v4 = vpop.permute.xlu0 %310 }
 0x21a   :  { %v315_v52 = vpop.permute.xlu1 %314  ;;  %447 = vrsqrt.f32 %v252_v47  ;;  %v262_v44 = vmul.f32 %v438_v48, %v588_v51 }
 0x21b   :  { %v295_v54 = vmax.f32 %v287_v49, 0.0  ;;  %v279_v55 = vmul.f32 %v383_v37, %v267_v53 }
 0x21c   :  { %v440_v56 = vpop.eup %439  ;;  %v274_v57 = vmul.f32 %v383_v37, %v262_v44 }
 0x21d   :  { %v442_v58 = vpop.eup %441  ;;  %v335_v59 = vadd.f32 %v313_v39, %v295_v54  ;;  %v265_v62 = vmul.f32 %v440_v56, %v585_v50  ;;  %v291_v0 = vadd.f32 %v384_v41, %v279_v55  ;;  %v319_v26 = vpop.permute.xlu0 %318 }
 0x21e   :  { %v317_v63 = vpop.permute.xlu1 %316  ;;  %v286_v1 = vadd.f32 %v384_v41, %v274_v57  ;;  %v266_v2 = vmul.f32 %v442_v58, %v601_v61 }
 0x21f   :  { %v343_v3 = vmax.f32 %v335_v59, 0.0  ;;  %v277_v5 = vmul.f32 %v383_v37, %v265_v62  ;;  %v299_v43 = vmax.f32 %v291_v0, 0.0 }
 0x220   :  { %v294_v9 = vmax.f32 %v286_v1, 0.0  ;;  %v278_v51 = vmul.f32 %v383_v37, %v266_v2 }
 0x221   :  { %v444_v8 = vpop.eup %443  ;;  %351 = vst.msk [vmem:[#allocation2 + $0x8] sm:$0xff] %vm164_vm1, %v343_v3  ;;  %v289_v11 = vadd.f32 %v384_v41, %v277_v5  ;;  %v323_v39 = vpop.permute.xlu0 %322 }
 0x222   :  { %v446_v10 = vpop.eup %445  ;;  %v321_v12 = vpop.permute.xlu1 %320  ;;  %v269_v13 = vmul.f32 %v444_v8, %v609_v6  ;;  %v334_v14 = vadd.f32 %v311_v4, %v294_v9  ;;  %v290_v15 = vadd.f32 %v384_v41, %v278_v51 }
 0x223   :  { %v264_v50 = vmul.f32 %v446_v10, %v598_v60  ;;  %v339_v16 = vadd.f32 %v321_v12, %v299_v43  ;;  %v297_v61 = vmax.f32 %v289_v11, 0.0 }
 0x224   :  { %v281_v19 = vmul.f32 %v383_v37, %v269_v13  ;;  %v448_v20 = vpop.eup %447  ;;  %v342_v17 = vmax.f32 %v334_v14, 0.0  ;;  %v298_v23 = vmax.f32 %v290_v15, 0.0 }
 0x225   :  { %v276_v22 = vmul.f32 %v383_v37, %v264_v50  ;;  %v347_v24 = vmax.f32 %v339_v16, 0.0  ;;  %v337_v25 = vadd.f32 %v317_v63, %v297_v61  ;;  %v268_v21 = vmul.f32 %v448_v20, %v612_v7 }
 0x226   :  { %v293_v18 = vadd.f32 %v384_v41, %v281_v19  ;;  %350 = vst.msk [vmem:[#allocation2] sm:$0xff] %vm164_vm1, %v342_v17  ;;  %v338_v6 = vadd.f32 %v319_v26, %v298_v23  ;;  %v325_v32 = vpop.permute.xlu1 %324 }
 0x227   :  { %v288_v27 = vadd.f32 %v384_v41, %v276_v22  ;;  %355 = vst.msk [vmem:[#allocation2 + $0x28] sm:$0xff] %vm164_vm1, %v347_v24  ;;  %v345_v60 = vmax.f32 %v337_v25, 0.0  ;;  %v280_v28 = vmul.f32 %v383_v37, %v268_v21 }
 0x228   :  { %v301_v29 = vmax.f32 %v293_v18, 0.0  ;;  %v346_v31 = vmax.f32 %v338_v6, 0.0 }
 0x229   :  { %v296_v30 = vmax.f32 %v288_v27, 0.0  ;;  %353 = vst.msk [vmem:[#allocation2 + $0x18] sm:$0xff] %vm164_vm1, %v345_v60  ;;  %v292_v33 = vadd.f32 %v384_v41, %v280_v28 }
 0x22a   :  { %v341_v34 = vadd.f32 %v325_v32, %v301_v29  ;;  %354 = vst.msk [vmem:[#allocation2 + $0x20] sm:$0xff] %vm164_vm1, %v346_v31 }
 0x22b   :  { %v336_v35 = vadd.f32 %v315_v52, %v296_v30  ;;  %v300_v7 = vmax.f32 %v292_v33, 0.0 }
 0x22c   :  { %v349_v36 = vmax.f32 %v341_v34, 0.0 }
 0x22d   :  { %v344_v38 = vmax.f32 %v336_v35, 0.0  ;;  %v340_v40 = vadd.f32 %v323_v39, %v300_v7 }
 0x22e   :  { %357 = vst.msk [vmem:[#allocation2 + $0x38] sm:$0xff] %vm164_vm1, %v349_v36 }
 0x22f   :  { %352 = vst.msk [vmem:[#allocation2 + $0x10] sm:$0xff] %vm164_vm1, %v344_v38  ;;  %v348_v37 = vmax.f32 %v340_v40, 0.0 }
 0x231   :  { %356 = vst.msk [vmem:[#allocation2 + $0x30] sm:$0xff] %vm164_vm1, %v348_v37 }
 0x232   :  { %460 = shalt.err (!%p457_p4)
}
 0x233   :  { %s461_s18 = scalar_lea.hbm %s669_s3, 1024 }
 0x234   :  { %p462_p5 = scmp.ne.s32.totalorder %s669_s3, %s461_s18  ;;  %p465_p6 = scmp.lt.u32.totalorder %s461_s18, %s669_s3 }
 0x236   :  { %p467_p7 = pnand %p465_p6, %p462_p5 }
 0x238   :  { %470 = shalt.err (!%p467_p7)
}
 0x239   :  { %s475_s23 = smov 128   ;;  %s476_s1 = smov 8  }
 0x23a   :  { %369 = dma.vmem_to_hbm [thread:$0]  %s364_s14, 1024, %s669_s3, [#allocation3], %s475_s23, %s475_s23, %s476_s1  }
 0x23b   :  { %471 = dma.done.wait [#allocation3], 1024  }
 0x23c   :  { %472 = vsyncadd [#allocation3], 4294966272 }
 0x23d   :  { %373 = vsyncpa [#allocation3], 1 }

// kernel: tpu_custom_call.1
= control target key start
LH: loop header
LB: loop body
LE: loop exit
PB: predicated region body
PF: predicated region fallthrough
CT: control target
= control target key end

     0   :  { %vm32_vm0 = vcmask 261120   ;;  %s666_s0 = inlined_call_operand.vmem [shape: f32[64,32], index: 0, kind: input, shape index: {}]   ;;  %s667_s1 = inlined_call_operand.vmem [shape: f32[32,128], index: 1, kind: input, shape index: {}]   ;;  %s668_s2 = inlined_call_operand.vmem [shape: f32[3,128], index: 2, kind: input, shape index: {}]   ;;  %s669_s3 = inlined_call_operand.hbm [shape: f32[64,64], index: 3, kind: output, shape index: {}]  }
   0x1   :  { %v23_v0 = vld [vmem:[%s667_s1] sm:$0xff]  ;;  %v24_v1 = vld [vmem:[%s667_s1 + $0x8] sm:$0xff]  ;;  %v25_v2 = vld [vmem:[%s667_s1 + $0x10] sm:$0xff] }
   0x2   :  { %v417_v3 = vpack.c.bf16 %v24_v1, %v23_v0  ;;  %v26_v4 = vld [vmem:[%s667_s1 + $0x18] sm:$0xff]  ;;  %v15_v5 = vld [vmem:[%s666_s0] sm:$0xff] }
   0x3   :  { %v19_v6 = vld [vmem:[%s666_s0 + $0x20] sm:$0xff]  ;;  %v421_v7 = vpack.c.bf16 %v26_v4, %v25_v2  ;;  %405 = vmatprep.mubr.msk.f32.mxu0 %vm32_vm0, %v15_v5 }
   0x4   :  { %411 = vmatprep.mubr.msk.f32.mxu1 %vm32_vm0, %v19_v6  ;;  %418 = vmatprep.subr.bf16.mxu0 %v417_v3 }
   0x5   :  { %425 = vmatprep.subr.bf16.mxu1 %v417_v3  ;;  %420 = vmatpush3.bf16.msra.mxu0 %v417_v3 }
   0x6   :  { %427 = vmatpush3.bf16.msra.mxu1 %v417_v3 }
   0x7   :  { %8 = vsyncpa [#allocation3], 0  ;;  %422 = vmatprep.subr.bf16.mxu0 %v421_v7  ;;  %426 = vmatprep.subr.bf16.mxu1 %v421_v7  ;;  %v16_v8 = vld [vmem:[%s666_s0 + $0x8] sm:$0xff]  ;;  %v17_v10 = vld [vmem:[%s666_s0 + $0x10] sm:$0xff]  ;;  %vm164_vm1 = vcmask 523264  }
   0x8   :  { %v20_v9 = vld [vmem:[%s666_s0 + $0x28] sm:$0xff]  ;;  %v21_v11 = vld [vmem:[%s666_s0 + $0x30] sm:$0xff]  ;;  %v18_v12 = vld [vmem:[%s666_s0 + $0x18] sm:$0xff] }
   0x9   :  { %424 = vmatpush3.bf16.msra.mxu0 %v421_v7  ;;  %v22_v13 = vld [vmem:[%s666_s0 + $0x38] sm:$0xff]  ;;  %v374_v14 = vld [vmem:[%s668_s2] ss:$0 sm:$0xff]  ;;  %s473_s0 = smov 64  }
   0xa   :  { %428 = vmatpush3.bf16.msra.mxu1 %v421_v7 }
   0xc   :  { %406 = vmatmul.mubr.msk.f32.vlgmr.msra.gmra.mrb[0].mxu0 %vm32_vm0, %v16_v8 }
   0xd   :  { %412 = vmatmul.mubr.msk.f32.vlgmr.msra.gmra.mrb[0].mxu1 %vm32_vm0, %v20_v9  ;;  %408 = vmatprep.mubr.msk.f32.mxu0 %vm32_vm0, %v17_v10 }
   0xe   :  { %414 = vmatprep.mubr.msk.f32.mxu1 %vm32_vm0, %v21_v11 }
  0x10   :  { %409 = vmatmul.mubr.msk.f32.gmra.mrb[2].mxu0 %vm32_vm0, %v18_v12 }
  0x11   :  { %415 = vmatmul.mubr.msk.f32.gmra.mrb[2].mxu1 %vm32_vm0, %v22_v13 }
  0xdf   :  { %v407_v15 = vpop.f32.mrb[0].mxu0 }
  0xe0   :  { %v413_v16 = vpop.f32.mrb[0].mxu1  ;;  %v544_v17 = vadd.f32 %v407_v15, %v374_v14  ;;  %v123_v19 = vpop.f32.mrb[1].mxu0 }
  0xe1   :  { %v546_v18 = vadd.f32 %v413_v16, %v374_v14  ;;  %v143_v20 = vpop.f32.mrb[1].mxu1  ;;  %v548_v21 = vadd.f32 %v374_v14, %v123_v19 }
  0xe2   :  { %v168_v23 = vsel %vm164_vm1, %v544_v17, 0.0  ;;  %v558_v30 = vadd.f32 %v374_v14, %v143_v20 }
  0xe3   :  { %v180_v22 = vsel %vm164_vm1, %v546_v18, 0.0  ;;  %169 = vadd.xlane.f32.xlu0 %v168_v23  ;;  %v410_v24 = vpop.f32.mrb[2].mxu0  ;;  %v165_v32 = vsel %vm164_vm1, %v548_v21, 0.0 }
  0xe4   :  { %181 = vadd.xlane.f32.xlu1 %v180_v22  ;;  %v416_v25 = vpop.f32.mrb[2].mxu1  ;;  %v554_v26 = vadd.f32 %v410_v24, %v374_v14  ;;  %v133_v27 = vpop.f32.mrb[3].mxu0  ;;  %v177_v36 = vsel %vm164_vm1, %v558_v30, 0.0 }
  0xe5   :  { %v153_v28 = vpop.f32.mrb[3].mxu1  ;;  %v556_v29 = vadd.f32 %v374_v14, %v133_v27  ;;  %v564_v33 = vadd.f32 %v416_v25, %v374_v14 }
  0xe6   :  { %v174_v31 = vsel %vm164_vm1, %v554_v26, 0.0  ;;  %v566_v34 = vadd.f32 %v374_v14, %v153_v28 }
  0xe7   :  { %166 = vadd.xlane.f32.xlu0 %v165_v32  ;;  %v171_v35 = vsel %vm164_vm1, %v556_v29, 0.0  ;;  %v186_v37 = vsel %vm164_vm1, %v564_v33, 0.0 }
  0xe8   :  { %175 = vadd.xlane.f32.xlu1 %v174_v31  ;;  %v183_v38 = vsel %vm164_vm1, %v566_v34, 0.0 }
  0xeb   :  { %178 = vadd.xlane.f32.xlu0 %v177_v36 }
  0xec   :  { %172 = vadd.xlane.f32.xlu1 %v171_v35 }
  0xef   :  { %184 = vadd.xlane.f32.xlu0 %v183_v38 }
  0xf0   :  { %187 = vadd.xlane.f32.xlu1 %v186_v37  ;;  %v383_v37 = vld [vmem:[%s668_s2 + $0x1] ss:$0 sm:$0xff] }
 0x170   :  { %v170_v40 = vpop.xlane.xlu0 %169 }
 0x171   :  { %v182_v39 = vpop.xlane.xlu1 %181  ;;  %v191_v42 = vmul.f32 0.015625, %v170_v40 }
 0x172   :  { %v195_v41 = vmul.f32 0.015625, %v182_v39 }
 0x173   :  { %v580_v44 = vsub.f32 %v544_v17, %v191_v42 }
 0x174   :  { %v577_v43 = vsub.f32 %v546_v18, %v195_v41  ;;  %v167_v46 = vpop.xlane.xlu0 %166  ;;  %v384_v41 = vld [vmem:[%s668_s2 + $0x2] ss:$0 sm:$0xff]  ;;  %s474_s2 = smov [#allocation2]  }
 0x175   :  { %v176_v45 = vpop.xlane.xlu1 %175  ;;  %v190_v48 = vmul.f32 0.015625, %v167_v46  ;;  %v207_v49 = vmul.f32 %v580_v44, %v580_v44  ;;  %s363_s14 = sshll.u32 %s474_s2, 4  ;;  %s364_s14 = int_to_ptr.vmem [resolvable:$true] %s363_s14 }
 0x176   :  { %v193_v47 = vmul.f32 0.015625, %v176_v45  ;;  %v211_v53 = vmul.f32 %v577_v43, %v577_v43  ;;  %s449_s15 = scalar_lea.vmem %s364_s14, 1024  ;;  %p454_p1 = scmp.lt.s32.totalorder %s364_s14, %s364_s14 }
 0x177   :  { %v588_v51 = vsub.f32 %v548_v21, %v190_v48  ;;  %v217_v52 = vsel %vm164_vm1, %v207_v49, 0.0  ;;  %p450_p0 = scmp.ne.s32.totalorder %s364_s14, %s449_s15  ;;  %p455_p2 = scmp.lt.s32.totalorder %s449_s15, %s449_s15 }
 0x178   :  { %v585_v50 = vsub.f32 %v554_v26, %v193_v47  ;;  %218 = vadd.xlane.f32.xlu1 %v217_v52  ;;  %v179_v55 = vpop.xlane.xlu0 %178  ;;  %v229_v62 = vsel %vm164_vm1, %v211_v53, 0.0 }
 0x179   :  { %v173_v54 = vpop.xlane.xlu1 %172  ;;  %v194_v57 = vmul.f32 0.015625, %v179_v55  ;;  %v206_v58 = vmul.f32 %v588_v51, %v588_v51  ;;  %p456_p3 = por %p455_p2, %p454_p1 }
 0x17a   :  { %v192_v56 = vmul.f32 0.015625, %v173_v54  ;;  %v209_v59 = vmul.f32 %v585_v50, %v585_v50 }
 0x17b   :  { %v601_v61 = vsub.f32 %v558_v30, %v194_v57  ;;  %v214_v63 = vsel %vm164_vm1, %v206_v58, 0.0  ;;  %p457_p4 = pnand %p456_p3, %p450_p0 }
 0x17c   :  { %v598_v60 = vsub.f32 %v556_v29, %v192_v56  ;;  %230 = vadd.xlane.f32.xlu1 %v229_v62  ;;  %215 = vadd.xlane.f32.xlu0 %v214_v63  ;;  %v185_v1 = vpop.xlane.xlu0 %184  ;;  %v223_v5 = vsel %vm164_vm1, %v209_v59, 0.0 }
 0x17d   :  { %v188_v0 = vpop.xlane.xlu1 %187  ;;  %v196_v3 = vmul.f32 0.015625, %v185_v1  ;;  %v210_v4 = vmul.f32 %v601_v61, %v601_v61 }
 0x17e   :  { %v197_v2 = vmul.f32 0.015625, %v188_v0  ;;  %v208_v9 = vmul.f32 %v598_v60, %v598_v60 }
 0x17f   :  { %v612_v7 = vsub.f32 %v566_v34, %v196_v3  ;;  %v226_v8 = vsel %vm164_vm1, %v210_v4, 0.0 }
 0x180   :  { %v609_v6 = vsub.f32 %v564_v33, %v197_v2  ;;  %224 = vadd.xlane.f32.xlu1 %v223_v5  ;;  %227 = vadd.xlane.f32.xlu0 %v226_v8  ;;  %v220_v12 = vsel %vm164_vm1, %v208_v9, 0.0 }
 0x181   :  { %v212_v13 = vmul.f32 %v612_v7, %v612_v7 }
 0x182   :  { %v213_v10 = vmul.f32 %v609_v6, %v609_v6 }
 0x183   :  { %v232_v14 = vsel %vm164_vm1, %v212_v13, 0.0 }
 0x184   :  { %v235_v11 = vsel %vm164_vm1, %v213_v10, 0.0  ;;  %221 = vadd.xlane.f32.xlu0 %v220_v12 }
 0x185   :  { %236 = vadd.xlane.f32.xlu1 %v235_v11 }
 0x188   :  { %233 = vadd.xlane.f32.xlu0 %v232_v14 }
 0x196   :  { %312 = vrot.lane.b32.xlu1 %v544_v17, %s473_s0 }
 0x19a   :  { %314 = vrot.lane.b32.xlu1 %v556_v29, %s473_s0 }
 0x19e   :  { %316 = vrot.lane.b32.xlu1 %v554_v26, %s473_s0  ;;  %310 = vrot.lane.b32.xlu0 %v548_v21, %s473_s0 }
 0x1a2   :  { %320 = vrot.lane.b32.xlu1 %v546_v18, %s473_s0  ;;  %318 = vrot.lane.b32.xlu0 %v558_v30, %s473_s0 }
 0x1a6   :  { %324 = vrot.lane.b32.xlu1 %v564_v33, %s473_s0  ;;  %322 = vrot.lane.b32.xlu0 %v566_v34, %s473_s0 }
 0x205   :  { %v219_v15 = vpop.xlane.xlu1 %218 }
 0x206   :  { %v239_v16 = vmul.f32 0.015625, %v219_v15 }
 0x208   :  { %v247_v19 = vadd.f32 1e-05, %v239_v16 }
 0x209   :  { %v231_v20 = vpop.xlane.xlu1 %230  ;;  %v216_v22 = vpop.xlane.xlu0 %215 }
 0x20a   :  { %433 = vrsqrt.f32 %v247_v19  ;;  %v243_v17 = vmul.f32 0.015625, %v231_v20  ;;  %v238_v23 = vmul.f32 0.015625, %v216_v22 }
 0x20c   :  { %v251_v24 = vadd.f32 1e-05, %v243_v17  ;;  %v246_v25 = vadd.f32 1e-05, %v238_v23 }
 0x20d   :  { %v225_v26 = vpop.xlane.xlu1 %224  ;;  %v228_v21 = vpop.xlane.xlu0 %227 }
 0x20e   :  { %435 = vrsqrt.f32 %v251_v24  ;;  %v241_v18 = vmul.f32 0.015625, %v225_v26  ;;  %v242_v27 = vmul.f32 0.015625, %v228_v21 }
 0x20f   :  { %437 = vrsqrt.f32 %v246_v25 }
 0x210   :  { %v249_v28 = vadd.f32 1e-05, %v241_v18  ;;  %v250_v29 = vadd.f32 1e-05, %v242_v27 }
 0x211   :  { %v222_v31 = vpop.xlane.xlu0 %221 }
 0x212   :  { %v237_v30 = vpop.xlane.xlu1 %236  ;;  %439 = vrsqrt.f32 %v249_v28  ;;  %v240_v33 = vmul.f32 0.015625, %v222_v31 }
 0x213   :  { %v245_v32 = vmul.f32 0.015625, %v237_v30  ;;  %441 = vrsqrt.f32 %v250_v29 }
 0x214   :  { %v434_v34 = vpop.eup %433  ;;  %v248_v36 = vadd.f32 1e-05, %v240_v33 }
 0x215   :  { %v253_v35 = vadd.f32 1e-05, %v245_v32  ;;  %v263_v38 = vmul.f32 %v434_v34, %v580_v44  ;;  %v234_v40 = vpop.xlane.xlu0 %233 }
 0x216   :  { %v313_v39 = vpop.permute.xlu1 %312  ;;  %v244_v42 = vmul.f32 0.015625, %v234_v40 }
 0x217   :  { %443 = vrsqrt.f32 %v253_v35  ;;  %v275_v45 = vmul.f32 %v383_v37, %v263_v38 }
 0x218   :  { %445 = vrsqrt.f32 %v248_v36  ;;  %v436_v46 = vpop.eup %435  ;;  %v252_v47 = vadd.f32 1e-05, %v244_v42 }
 0x219   :  { %v438_v48 = vpop.eup %437  ;;  %v287_v49 = vadd.f32 %v384_v41, %v275_v45  ;;  %v267_v53 = vmul.f32 %v436_v46, %v577_v43  ;;  %v311_v4 = vpop.permute.xlu0 %310 }
 0x21a   :  { %v315_v52 = vpop.permute.xlu1 %314  ;;  %447 = vrsqrt.f32 %v252_v47  ;;  %v262_v44 = vmul.f32 %v438_v48, %v588_v51 }
 0x21b   :  { %v295_v54 = vmax.f32 %v287_v49, 0.0  ;;  %v279_v55 = vmul.f32 %v383_v37, %v267_v53 }
 0x21c   :  { %v440_v56 = vpop.eup %439  ;;  %v274_v57 = vmul.f32 %v383_v37, %v262_v44 }
 0x21d   :  { %v442_v58 = vpop.eup %441  ;;  %v335_v59 = vadd.f32 %v313_v39, %v295_v54  ;;  %v265_v62 = vmul.f32 %v440_v56, %v585_v50  ;;  %v291_v0 = vadd.f32 %v384_v41, %v279_v55  ;;  %v319_v26 = vpop.permute.xlu0 %318 }
 0x21e   :  { %v317_v63 = vpop.permute.xlu1 %316  ;;  %v286_v1 = vadd.f32 %v384_v41, %v274_v57  ;;  %v266_v2 = vmul.f32 %v442_v58, %v601_v61 }
 0x21f   :  { %v343_v3 = vmax.f32 %v335_v59, 0.0  ;;  %v277_v5 = vmul.f32 %v383_v37, %v265_v62  ;;  %v299_v43 = vmax.f32 %v291_v0, 0.0 }
 0x220   :  { %v294_v9 = vmax.f32 %v286_v1, 0.0  ;;  %v278_v51 = vmul.f32 %v383_v37, %v266_v2 }
 0x221   :  { %v444_v8 = vpop.eup %443  ;;  %351 = vst.msk [vmem:[#allocation2 + $0x8] sm:$0xff] %vm164_vm1, %v343_v3  ;;  %v289_v11 = vadd.f32 %v384_v41, %v277_v5  ;;  %v323_v39 = vpop.permute.xlu0 %322 }
 0x222   :  { %v446_v10 = vpop.eup %445  ;;  %v321_v12 = vpop.permute.xlu1 %320  ;;  %v269_v13 = vmul.f32 %v444_v8, %v609_v6  ;;  %v334_v14 = vadd.f32 %v311_v4, %v294_v9  ;;  %v290_v15 = vadd.f32 %v384_v41, %v278_v51 }
 0x223   :  { %v264_v50 = vmul.f32 %v446_v10, %v598_v60  ;;  %v339_v16 = vadd.f32 %v321_v12, %v299_v43  ;;  %v297_v61 = vmax.f32 %v289_v11, 0.0 }
 0x224   :  { %v281_v19 = vmul.f32 %v383_v37, %v269_v13  ;;  %v448_v20 = vpop.eup %447  ;;  %v342_v17 = vmax.f32 %v334_v14, 0.0  ;;  %v298_v23 = vmax.f32 %v290_v15, 0.0 }
 0x225   :  { %v276_v22 = vmul.f32 %v383_v37, %v264_v50  ;;  %v347_v24 = vmax.f32 %v339_v16, 0.0  ;;  %v337_v25 = vadd.f32 %v317_v63, %v297_v61  ;;  %v268_v21 = vmul.f32 %v448_v20, %v612_v7 }
 0x226   :  { %v293_v18 = vadd.f32 %v384_v41, %v281_v19  ;;  %350 = vst.msk [vmem:[#allocation2] sm:$0xff] %vm164_vm1, %v342_v17  ;;  %v338_v6 = vadd.f32 %v319_v26, %v298_v23  ;;  %v325_v32 = vpop.permute.xlu1 %324 }
 0x227   :  { %v288_v27 = vadd.f32 %v384_v41, %v276_v22  ;;  %355 = vst.msk [vmem:[#allocation2 + $0x28] sm:$0xff] %vm164_vm1, %v347_v24  ;;  %v345_v60 = vmax.f32 %v337_v25, 0.0  ;;  %v280_v28 = vmul.f32 %v383_v37, %v268_v21 }
 0x228   :  { %v301_v29 = vmax.f32 %v293_v18, 0.0  ;;  %v346_v31 = vmax.f32 %v338_v6, 0.0 }
 0x229   :  { %v296_v30 = vmax.f32 %v288_v27, 0.0  ;;  %353 = vst.msk [vmem:[#allocation2 + $0x18] sm:$0xff] %vm164_vm1, %v345_v60  ;;  %v292_v33 = vadd.f32 %v384_v41, %v280_v28 }
 0x22a   :  { %v341_v34 = vadd.f32 %v325_v32, %v301_v29  ;;  %354 = vst.msk [vmem:[#allocation2 + $0x20] sm:$0xff] %vm164_vm1, %v346_v31 }
 0x22b   :  { %v336_v35 = vadd.f32 %v315_v52, %v296_v30  ;;  %v300_v7 = vmax.f32 %v292_v33, 0.0 }
 0x22c   :  { %v349_v36 = vmax.f32 %v341_v34, 0.0 }
 0x22d   :  { %v344_v38 = vmax.f32 %v336_v35, 0.0  ;;  %v340_v40 = vadd.f32 %v323_v39, %v300_v7 }
 0x22e   :  { %357 = vst.msk [vmem:[#allocation2 + $0x38] sm:$0xff] %vm164_vm1, %v349_v36 }
 0x22f   :  { %352 = vst.msk [vmem:[#allocation2 + $0x10] sm:$0xff] %vm164_vm1, %v344_v38  ;;  %v348_v37 = vmax.f32 %v340_v40, 0.0 }
 0x231   :  { %356 = vst.msk [vmem:[#allocation2 + $0x30] sm:$0xff] %vm164_vm1, %v348_v37 }
 0x232   :  { %460 = shalt.err (!%p457_p4)
}
 0x233   :  { %s461_s18 = scalar_lea.hbm %s669_s3, 1024 }
 0x234   :  { %p462_p5 = scmp.ne.s32.totalorder %s669_s3, %s461_s18  ;;  %p465_p6 = scmp.lt.u32.totalorder %s461_s18, %s669_s3 }
 0x236   :  { %p467_p7 = pnand %p465_p6, %p462_p5 }
 0x238   :  { %470 = shalt.err (!%p467_p7)
}
 0x239   :  { %s475_s23 = smov 128   ;;  %s476_s1 = smov 8  }
 0x23a   :  { %369 = dma.vmem_to_hbm [thread:$0]  %s364_s14, 1024, %s669_s3, [#allocation3], %s475_s23, %s475_s23, %s476_s1  }
 0x23b   :  { %471 = dma.done.wait [#allocation3], 1024  }
 0x23c   :  { %472 = vsyncadd [#allocation3], 4294966272 }
 0x23d   :  { %373 = vsyncpa [#allocation3], 1 }

</bundles_post_ra>
